<compile_context>
chip_gen: v7x
topology: tpu7x:2x2x1
jax: 0.10.0
libtpu: 0.0.40
codegen_flags: <defaults>
</compile_context>

<pallas_src>
import functools

import jax
import jax.numpy as jnp
from jax.experimental import pallas as pl
from jax.experimental.pallas import tpu as pltpu


_DP = 8       # coordinate axis padded to one sublane tile: [coords, 1, ||.||^2, zeros]
_BIG = 1e30   # "squared distance" sentinel for padded points (finite -> f32/MXU safe)
_STRIP = 128  # LHS points per in-kernel strip matmul

# Contract the 8-wide sublane axis (axis 0) of both lane-dense operands.
_TN_DIMS = (((0,), (0,)), ((), ()))


def _chamfer_kernel(x_ref, y_ref, min1_ref, min2_ref):
    # x_ref:    (1, 8, tn)  rows: [x0..x{D-1}, 1, ||x||^2 (BIG on pad cols), 0...]
    # y_ref:    (1, 8, tm)  rows: [-2*y0..-2*y{D-1}, ||y||^2 (BIG on pad cols), 1, 0...]
    # min1_ref: (1, n_tiles, 1, tn)  resident per batch element; row ni = running
    #                                min-over-y squared distance for x tile ni.
    # min2_ref: (1, m_tiles, 1, tm)  resident per batch element; row mi = running
    #                                min-over-x squared distance for y tile mi.
    ni = pl.program_id(1)
    mi = pl.program_id(2)
    n_last = pl.num_programs(1) - 1
    m_last = pl.num_programs(2) - 1

    x = x_ref[0]                      # (8, tn)
    y = y_ref[0]                      # (8, tm)

    def min_d2_over_lhs(lhs, rhs):
        # For every rhs point, the min over lhs points of the squared distance.
        # Strip-mined: each (strip, rhs_width) d2 block is folded into the running
        # min right away so the full d2 tile never exists / never round-trips
        # through VMEM.  The static Python loop is fully unrolled (same effect as
        # lax.fori_loop(..., unroll=True)); all slice offsets are static multiples
        # of 128.
        width = lhs.shape[1]
        strip = min(_STRIP, width)
        acc = None
        for s in range(0, width, strip):
            d2 = jax.lax.dot_general(
                lhs[:, s:s + strip], rhs, _TN_DIMS,
                preferred_element_type=jnp.float32,
                precision=jax.lax.Precision.HIGHEST,
            )                                             # (strip, rhs_width)
            part = jnp.min(d2, axis=0, keepdims=True)     # sublane reduce -> (1, rhs_width)
            acc = part if acc is None else jnp.minimum(acc, part)
        return acc

    p1 = min_d2_over_lhs(y, x)        # (1, tn): per x point, min d2 over this y tile
    p2 = min_d2_over_lhs(x, y)        # (1, tm): per y point, min d2 over this x tile

    # ---- min over y (per x point): slice ni accumulates across the inner m axis ----
    @pl.when(mi == 0)
    def _():
        min1_ref[0, ni] = p1

    @pl.when(mi > 0)
    def _():
        min1_ref[0, ni] = jnp.minimum(min1_ref[0, ni], p1)

    @pl.when(mi == m_last)
    def _():  # sqrt only after the reduction; clamp guards tiny negative round-off
        min1_ref[0, ni] = jnp.sqrt(1e-8 + jnp.maximum(min1_ref[0, ni], 0.0))

    # ---- min over x (per y point): slice mi accumulates across the outer n axis ----
    @pl.when(ni == 0)
    def _():
        min2_ref[0, mi] = p2

    @pl.when(ni > 0)
    def _():
        min2_ref[0, mi] = jnp.minimum(min2_ref[0, mi], p2)

    @pl.when(ni == n_last)
    def _():
        min2_ref[0, mi] = jnp.sqrt(1e-8 + jnp.maximum(min2_ref[0, mi], 0.0))


def _round_up(x, m):
    return (x + m - 1) // m * m


def _augment(pts, *, scale, sq_then_one, pad_to):
    """pts: (B, P, D) centered cloud -> (B, 8, pad_to) lane-dense augmented array.

    Row layout (x cloud, sq_then_one=False): [ coords, 1, ||.||^2, zeros ]
    Row layout (y cloud, sq_then_one=True):  [ -2*coords, ||.||^2, 1, zeros ]
    Padded columns are zero except the ||.||^2 row, which carries _BIG so any pairing
    with a real point yields a huge squared distance (never selected by the min).
    Built with a single concatenate per cloud (no chained full-size .at[].set()).
    """
    B, P, D = pts.shape
    f32 = jnp.float32
    ptsT = jnp.swapaxes(pts, 1, 2)                       # (B, D, P)
    sq = jnp.sum(ptsT * ptsT, axis=1, keepdims=True)     # (B, 1, P)  (unscaled norms)
    one = jnp.ones((B, 1, P), f32)
    zero = jnp.zeros((B, _DP - D - 2, P), f32)
    mid = [sq, one] if sq_then_one else [one, sq]
    aug = jnp.concatenate([scale * ptsT] + mid + [zero], axis=1)   # (B, 8, P)
    if pad_to > P:
        norm_row = D if sq_then_one else D + 1
        pad = jnp.zeros((B, _DP, pad_to - P), f32).at[:, norm_row, :].set(_BIG)
        aug = jnp.concatenate([aug, pad], axis=2)
    return aug


def chamfer_loss(x1, y1, *, tile_n=1024, tile_m=1024):
    """x1: (B, N, D), y1: (B, M, D) -> scalar Chamfer loss (== ChamferLoss.forward)."""
    B, N, D = x1.shape
    By, M, Dy = y1.shape
    assert B == By and D == Dy and D <= _DP - 2
    assert tile_n % 128 == 0 and tile_m % 128 == 0

    f32 = jnp.float32
    x1 = x1.astype(f32)
    y1 = y1.astype(f32)

    # Shared centroid subtraction: distances are mathematically unchanged, but the
    # ||x||^2 + ||y||^2 - 2 x.y expansion stays well conditioned for clouds that sit
    # far from the origin.
    centroid = (jnp.sum(x1, axis=1) + jnp.sum(y1, axis=1)) / (N + M)   # (B, D)
    xc = x1 - centroid[:, None, :]
    yc = y1 - centroid[:, None, :]

    tn = min(tile_n, _round_up(N, 128))
    tm = min(tile_m, _round_up(M, 128))
    n_pad = _round_up(N, tn)
    m_pad = _round_up(M, tm)
    n_tiles = n_pad // tn
    m_tiles = m_pad // tm

    x_lane = _augment(xc, scale=1.0, sq_then_one=False, pad_to=n_pad)   # (B, 8, n_pad)
    y_lane = _augment(yc, scale=-2.0, sq_then_one=True, pad_to=m_pad)   # (B, 8, m_pad)

    min1, min2 = pl.pallas_call(
        _chamfer_kernel,
        out_shape=(
            jax.ShapeDtypeStruct((B, n_tiles, 1, tn), f32),
            jax.ShapeDtypeStruct((B, m_tiles, 1, tm), f32),
        ),
        grid_spec=pltpu.PrefetchScalarGridSpec(
            num_scalar_prefetch=0,
            grid=(B, n_tiles, m_tiles),
            in_specs=[
                pl.BlockSpec((1, _DP, tn), lambda b, ni, mi: (b, 0, ni)),
                pl.BlockSpec((1, _DP, tm), lambda b, ni, mi: (b, 0, mi)),
            ],
            out_specs=[
                # Resident per batch element across the whole (ni, mi) loop: the kernel
                # updates one lane-dense row per step; HBM write-back happens once per b.
                pl.BlockSpec((1, n_tiles, 1, tn), lambda b, ni, mi: (b, 0, 0, 0)),
                pl.BlockSpec((1, m_tiles, 1, tm), lambda b, ni, mi: (b, 0, 0, 0)),
            ],
        ),
        compiler_params=pltpu.CompilerParams(
            # min1 reduces across mi and min2 across ni -> both inner axes must stay
            # sequential on one core; only the batch axis is megacore-parallel.
            dimension_semantics=("parallel", "arbitrary", "arbitrary"),
        ),
    )(x_lane, y_lane)

    # Drop padded points before the means (matches torch: mean over (B,N) + mean over (B,M)).
    min1 = min1.reshape(B, n_pad)[:, :N]
    min2 = min2.reshape(B, m_pad)[:, :M]
    return jnp.mean(min1) + jnp.mean(min2)


def _chamfer_loss_ref(x1, y1):
    # Pure-JAX reference mirroring the torch module exactly.
    x = x1[:, None, :, :]                                  # (B, 1, N, D)
    y = y1[:, :, None, :]                                  # (B, M, 1, D)
    dist = jnp.sqrt(1e-8 + jnp.sum((x - y) ** 2, axis=3))  # (B, M, N)
    return jnp.mean(jnp.min(dist, axis=1)) + jnp.mean(jnp.min(dist, axis=2))


if __name__ == "__main__":
    key = jax.random.PRNGKey(0)
    k1, k2, k3, k4 = jax.random.split(key, 4)

    # Small shapes matching the module's (B, num_points, 3) convention.
    B, N, M, D = 2, 128, 64, 3
    x1 = jax.random.normal(k1, (B, N, D), dtype=jnp.float32)
    y1 = jax.random.normal(k2, (B, M, D), dtype=jnp.float32) + 0.5
    loss = jax.block_until_ready(jax.jit(chamfer_loss)(x1, y1))
    ref = _chamfer_loss_ref(x1, y1)
    assert jnp.allclose(loss, ref, rtol=1e-3, atol=1e-3), (loss, ref)

    # Second case exercising padding + multi-tile min accumulation along both axes.
    N2, M2 = 600, 300
    x2 = jax.random.normal(k3, (B, N2, D), dtype=jnp.float32)
    y2 = jax.random.normal(k4, (B, M2, D), dtype=jnp.float32)
    tiled = functools.partial(chamfer_loss, tile_n=256, tile_m=128)
    loss2 = jax.block_until_ready(jax.jit(tiled)(x2, y2))
    ref2 = _chamfer_loss_ref(x2, y2)
    assert jnp.allclose(loss2, ref2, rtol=1e-3, atol=1e-3), (loss2, ref2)

    print("KERNEL_OK")
</pallas_src>

<mosaic_0001>
module attributes {stable_mosaic.version = 11 : i64} {
  func.func @_chamfer_kernel(%arg0: i32, %arg1: i32, %arg2: i32, %arg3: memref<1x8x128xf32, #tpu.memory_space<vmem>>, %arg4: memref<1x8x128xf32, #tpu.memory_space<vmem>>, %arg5: memref<1x1x1x128xf32, #tpu.memory_space<vmem>>, %arg6: memref<1x1x1x128xf32, #tpu.memory_space<vmem>>) attributes {dimension_semantics = [#tpu.dimension_semantics<parallel>, #tpu.dimension_semantics<arbitrary>, #tpu.dimension_semantics<arbitrary>], iteration_bounds = array<i64: 2, 1, 1>, scalar_prefetch = 0 : i64, scratch_operands = 0 : i64, tpu.core_type = #tpu.core_type<tc>, window_params = [{transform_indices = @transform_0, window_bounds = array<i64: 1, 8, 128>}, {transform_indices = @transform_1, window_bounds = array<i64: 1, 8, 128>}, {transform_indices = @transform_2, window_bounds = array<i64: 1, 1, 1, 128>}, {transform_indices = @transform_3, window_bounds = array<i64: 1, 1, 1, 128>}]} {
    %c0 = arith.constant 0 : index
    %c0_0 = arith.constant 0 : index
    %c0_1 = arith.constant 0 : index
    %0 = vector.load %arg3[%c0, %c0_0, %c0_1] : memref<1x8x128xf32, #tpu.memory_space<vmem>>, vector<1x8x128xf32>
    %1 = vector.shape_cast %0 : vector<1x8x128xf32> to vector<8x128xf32>
    %c0_2 = arith.constant 0 : index
    %c0_3 = arith.constant 0 : index
    %c0_4 = arith.constant 0 : index
    %2 = vector.load %arg4[%c0_2, %c0_3, %c0_4] : memref<1x8x128xf32, #tpu.memory_space<vmem>>, vector<1x8x128xf32>
    %3 = vector.shape_cast %2 : vector<1x8x128xf32> to vector<8x128xf32>
    %cst = arith.constant dense<0.000000e+00> : vector<128x128xf32>
    %4 = tpu.matmul %3, %1, %cst {dimension_numbers = #tpu.dot_dimension_numbers<[0], [0], [1], [1], [0, 1, 1, 1], [], []>, precision = #tpu.contract_precision<fp32>} : vector<8x128xf32>, vector<8x128xf32>, vector<128x128xf32> -> vector<128x128xf32>
    %cst_5 = arith.constant dense<0x7F800000> : vector<128xf32>
    %5 = vector.multi_reduction <minimumf>, %4, %cst_5 [0] : vector<128x128xf32> to vector<128xf32>
    %6 = vector.shape_cast %5 : vector<128xf32> to vector<1x128xf32>
    %cst_6 = arith.constant dense<0.000000e+00> : vector<128x128xf32>
    %7 = tpu.matmul %1, %3, %cst_6 {dimension_numbers = #tpu.dot_dimension_numbers<[0], [0], [1], [1], [0, 1, 1, 1], [], []>, precision = #tpu.contract_precision<fp32>} : vector<8x128xf32>, vector<8x128xf32>, vector<128x128xf32> -> vector<128x128xf32>
    %cst_7 = arith.constant dense<0x7F800000> : vector<128xf32>
    %8 = vector.multi_reduction <minimumf>, %7, %cst_7 [0] : vector<128x128xf32> to vector<128xf32>
    %9 = vector.shape_cast %8 : vector<128xf32> to vector<1x128xf32>
    %c0_i32 = arith.constant 0 : i32
    %10 = arith.cmpi eq, %arg2, %c0_i32 : i32
    %11 = arith.extui %10 : i1 to i32
    %c0_i32_8 = arith.constant 0 : i32
    %12 = arith.cmpi ne, %11, %c0_i32_8 : i32
    scf.if %12 {
      %c0_19 = arith.constant 0 : index
      %28 = arith.index_cast %arg1 : i32 to index
      %c0_20 = arith.constant 0 : index
      %c0_21 = arith.constant 0 : index
      %29 = vector.load %arg5[%c0_19, %28, %c0_20, %c0_21] : memref<1x1x1x128xf32, #tpu.memory_space<vmem>>, vector<1x1x1x128xf32>
      %30 = vector.shape_cast %29 : vector<1x1x1x128xf32> to vector<1x128xf32>
      %31 = vector.shape_cast %6 : vector<1x128xf32> to vector<1x1x1x128xf32>
      tpu.vector_store %arg5[%c0_19, %28, %c0_20, %c0_21], %31 {strides = array<i32>} : memref<1x1x1x128xf32, #tpu.memory_space<vmem>>, vector<1x1x1x128xf32>,
    } else {
    }
    %c0_i32_9 = arith.constant 0 : i32
    %13 = arith.cmpi sgt, %arg2, %c0_i32_9 : i32
    %14 = arith.extui %13 : i1 to i32
    %c0_i32_10 = arith.constant 0 : i32
    %15 = arith.cmpi ne, %14, %c0_i32_10 : i32
    scf.if %15 {
      %c0_19 = arith.constant 0 : index
      %28 = arith.index_cast %arg1 : i32 to index
      %c0_20 = arith.constant 0 : index
      %c0_21 = arith.constant 0 : index
      %29 = vector.load %arg5[%c0_19, %28, %c0_20, %c0_21] : memref<1x1x1x128xf32, #tpu.memory_space<vmem>>, vector<1x1x1x128xf32>
      %30 = vector.shape_cast %29 : vector<1x1x1x128xf32> to vector<1x128xf32>
      %31 = arith.minimumf %30, %6 : vector<1x128xf32>
      %c0_22 = arith.constant 0 : index
      %32 = arith.index_cast %arg1 : i32 to index
      %c0_23 = arith.constant 0 : index
      %c0_24 = arith.constant 0 : index
      %33 = vector.load %arg5[%c0_22, %32, %c0_23, %c0_24] : memref<1x1x1x128xf32, #tpu.memory_space<vmem>>, vector<1x1x1x128xf32>
      %34 = vector.shape_cast %33 : vector<1x1x1x128xf32> to vector<1x128xf32>
      %35 = vector.shape_cast %31 : vector<1x128xf32> to vector<1x1x1x128xf32>
      tpu.vector_store %arg5[%c0_22, %32, %c0_23, %c0_24], %35 {strides = array<i32>} : memref<1x1x1x128xf32, #tpu.memory_space<vmem>>, vector<1x1x1x128xf32>,
    } else {
    }
    %c0_i32_11 = arith.constant 0 : i32
    %16 = arith.cmpi eq, %arg2, %c0_i32_11 : i32
    %17 = arith.extui %16 : i1 to i32
    %c0_i32_12 = arith.constant 0 : i32
    %18 = arith.cmpi ne, %17, %c0_i32_12 : i32
    scf.if %18 {
      %c0_19 = arith.constant 0 : index
      %28 = arith.index_cast %arg1 : i32 to index
      %c0_20 = arith.constant 0 : index
      %c0_21 = arith.constant 0 : index
      %29 = vector.load %arg5[%c0_19, %28, %c0_20, %c0_21] : memref<1x1x1x128xf32, #tpu.memory_space<vmem>>, vector<1x1x1x128xf32>
      %30 = vector.shape_cast %29 : vector<1x1x1x128xf32> to vector<1x128xf32>
      %cst_22 = arith.constant 0.000000e+00 : f32
      %31 = vector.broadcast %cst_22 : f32 to vector<1x128xf32>
      %32 = arith.maximumf %30, %31 : vector<1x128xf32>
      %cst_23 = arith.constant 9.99999993E-9 : f32
      %33 = vector.broadcast %cst_23 : f32 to vector<1x128xf32>
      %34 = arith.addf %33, %32 : vector<1x128xf32>
      %35 = math.sqrt %34 : vector<1x128xf32>
      %c0_24 = arith.constant 0 : index
      %36 = arith.index_cast %arg1 : i32 to index
      %c0_25 = arith.constant 0 : index
      %c0_26 = arith.constant 0 : index
      %37 = vector.load %arg5[%c0_24, %36, %c0_25, %c0_26] : memref<1x1x1x128xf32, #tpu.memory_space<vmem>>, vector<1x1x1x128xf32>
      %38 = vector.shape_cast %37 : vector<1x1x1x128xf32> to vector<1x128xf32>
      %39 = vector.shape_cast %35 : vector<1x128xf32> to vector<1x1x1x128xf32>
      tpu.vector_store %arg5[%c0_24, %36, %c0_25, %c0_26], %39 {strides = array<i32>} : memref<1x1x1x128xf32, #tpu.memory_space<vmem>>, vector<1x1x1x128xf32>,
    } else {
    }
    %c0_i32_13 = arith.constant 0 : i32
    %19 = arith.cmpi eq, %arg1, %c0_i32_13 : i32
    %20 = arith.extui %19 : i1 to i32
    %c0_i32_14 = arith.constant 0 : i32
    %21 = arith.cmpi ne, %20, %c0_i32_14 : i32
    scf.if %21 {
      %c0_19 = arith.constant 0 : index
      %28 = arith.index_cast %arg2 : i32 to index
      %c0_20 = arith.constant 0 : index
      %c0_21 = arith.constant 0 : index
      %29 = vector.load %arg6[%c0_19, %28, %c0_20, %c0_21] : memref<1x1x1x128xf32, #tpu.memory_space<vmem>>, vector<1x1x1x128xf32>
      %30 = vector.shape_cast %29 : vector<1x1x1x128xf32> to vector<1x128xf32>
      %31 = vector.shape_cast %9 : vector<1x128xf32> to vector<1x1x1x128xf32>
      tpu.vector_store %arg6[%c0_19, %28, %c0_20, %c0_21], %31 {strides = array<i32>} : memref<1x1x1x128xf32, #tpu.memory_space<vmem>>, vector<1x1x1x128xf32>,
    } else {
    }
    %c0_i32_15 = arith.constant 0 : i32
    %22 = arith.cmpi sgt, %arg1, %c0_i32_15 : i32
    %23 = arith.extui %22 : i1 to i32
    %c0_i32_16 = arith.constant 0 : i32
    %24 = arith.cmpi ne, %23, %c0_i32_16 : i32
    scf.if %24 {
      %c0_19 = arith.constant 0 : index
      %28 = arith.index_cast %arg2 : i32 to index
      %c0_20 = arith.constant 0 : index
      %c0_21 = arith.constant 0 : index
      %29 = vector.load %arg6[%c0_19, %28, %c0_20, %c0_21] : memref<1x1x1x128xf32, #tpu.memory_space<vmem>>, vector<1x1x1x128xf32>
      %30 = vector.shape_cast %29 : vector<1x1x1x128xf32> to vector<1x128xf32>
      %31 = arith.minimumf %30, %9 : vector<1x128xf32>
      %c0_22 = arith.constant 0 : index
      %32 = arith.index_cast %arg2 : i32 to index
      %c0_23 = arith.constant 0 : index
      %c0_24 = arith.constant 0 : index
      %33 = vector.load %arg6[%c0_22, %32, %c0_23, %c0_24] : memref<1x1x1x128xf32, #tpu.memory_space<vmem>>, vector<1x1x1x128xf32>
      %34 = vector.shape_cast %33 : vector<1x1x1x128xf32> to vector<1x128xf32>
      %35 = vector.shape_cast %31 : vector<1x128xf32> to vector<1x1x1x128xf32>
      tpu.vector_store %arg6[%c0_22, %32, %c0_23, %c0_24], %35 {strides = array<i32>} : memref<1x1x1x128xf32, #tpu.memory_space<vmem>>, vector<1x1x1x128xf32>,
    } else {
    }
    %c0_i32_17 = arith.constant 0 : i32
    %25 = arith.cmpi eq, %arg1, %c0_i32_17 : i32
    %26 = arith.extui %25 : i1 to i32
    %c0_i32_18 = arith.constant 0 : i32
    %27 = arith.cmpi ne, %26, %c0_i32_18 : i32
    scf.if %27 {
      %c0_19 = arith.constant 0 : index
      %28 = arith.index_cast %arg2 : i32 to index
      %c0_20 = arith.constant 0 : index
      %c0_21 = arith.constant 0 : index
      %29 = vector.load %arg6[%c0_19, %28, %c0_20, %c0_21] : memref<1x1x1x128xf32, #tpu.memory_space<vmem>>, vector<1x1x1x128xf32>
      %30 = vector.shape_cast %29 : vector<1x1x1x128xf32> to vector<1x128xf32>
      %cst_22 = arith.constant 0.000000e+00 : f32
      %31 = vector.broadcast %cst_22 : f32 to vector<1x128xf32>
      %32 = arith.maximumf %30, %31 : vector<1x128xf32>
      %cst_23 = arith.constant 9.99999993E-9 : f32
      %33 = vector.broadcast %cst_23 : f32 to vector<1x128xf32>
      %34 = arith.addf %33, %32 : vector<1x128xf32>
      %35 = math.sqrt %34 : vector<1x128xf32>
      %c0_24 = arith.constant 0 : index
      %36 = arith.index_cast %arg2 : i32 to index
      %c0_25 = arith.constant 0 : index
      %c0_26 = arith.constant 0 : index
      %37 = vector.load %arg6[%c0_24, %36, %c0_25, %c0_26] : memref<1x1x1x128xf32, #tpu.memory_space<vmem>>, vector<1x1x1x128xf32>
      %38 = vector.shape_cast %37 : vector<1x1x1x128xf32> to vector<1x128xf32>
      %39 = vector.shape_cast %35 : vector<1x128xf32> to vector<1x1x1x128xf32>
      tpu.vector_store %arg6[%c0_24, %36, %c0_25, %c0_26], %39 {strides = array<i32>} : memref<1x1x1x128xf32, #tpu.memory_space<vmem>>, vector<1x1x1x128xf32>,
    } else {
    }
    return
  }
  func.func @transform_0(%arg0: i32, %arg1: i32, %arg2: i32) -> (i32, i32, i32) {
    %c0_i32 = arith.constant 0 : i32
    %c0_i32_0 = arith.constant 0 : i32
    return %arg0, %c0_i32, %arg1 : i32, i32, i32
  }
  func.func @transform_1(%arg0: i32, %arg1: i32, %arg2: i32) -> (i32, i32, i32) {
    %c0_i32 = arith.constant 0 : i32
    %c0_i32_0 = arith.constant 0 : i32
    return %arg0, %c0_i32, %arg2 : i32, i32, i32
  }
  func.func @transform_2(%arg0: i32, %arg1: i32, %arg2: i32) -> (i32, i32, i32, i32) {
    %c0_i32 = arith.constant 0 : i32
    %c0_i32_0 = arith.constant 0 : i32
    %c0_i32_1 = arith.constant 0 : i32
    %c0_i32_2 = arith.constant 0 : i32
    return %arg0, %c0_i32, %c0_i32_0, %c0_i32_1 : i32, i32, i32, i32
  }
  func.func @transform_3(%arg0: i32, %arg1: i32, %arg2: i32) -> (i32, i32, i32, i32) {
    %c0_i32 = arith.constant 0 : i32
    %c0_i32_0 = arith.constant 0 : i32
    %c0_i32_1 = arith.constant 0 : i32
    %c0_i32_2 = arith.constant 0 : i32
    return %arg0, %c0_i32, %c0_i32_0, %c0_i32_1 : i32, i32, i32, i32
  }
}

</mosaic_0001>

<bundles_post_ra>
// kernel: chamfer_loss.1
= control target key start
LH: loop header
LB: loop body
LE: loop exit
PB: predicated region body
PF: predicated region fallthrough
CT: control target
= control target key end

     0   :  { %s3541_s12 = smov 0   ;;  %s3543_s13 = smov 0   ;;  %s4141_s0 = inlined_call_operand.vmem [shape: f32[2,8,128], index: 0, kind: input, shape index: {}]   ;;  %s4142_s1 = inlined_call_operand.vmem [shape: f32[2,8,128], index: 1, kind: input, shape index: {}]   ;;  %s4143_s2 = inlined_call_operand.vmem [shape: f32[2,1,1,128], index: 2, kind: output, shape index: {0}]   ;;  %s4144_s3 = inlined_call_operand.vmem [shape: f32[2,1,1,128], index: 3, kind: output, shape index: {1}]  }
   0x1   :  { %s3545_s14 = smov 0  }
   0x2 LB: > { %s33_s15 = sadd.s32 1, %s3515_s13  ;;  %p2787_p0 = scmp.ge.s32.totalorder %s3519_s14, 1  ;;  %s3519_s14 = sphi %s3545_s14, %s14_s14   ;;  %s3515_s13 = sphi %s3543_s13, %s4254_s13   ;;  %s3511_s12 = sphi %s3541_s12, %s4253_s12  }
   0x3   : > { %p35_p1 = scmp.ge.s32.totalorder %s33_s15, 2  ;;  %p177_p2 = scmp.lt.s32.totalorder %s3519_s14, 3 }
   0x5   : > { %s4256_s15 = smov (%p35_p1, %s33_s15), 0  ;;  %p178_p3 = pnand %p2787_p0, %p177_p2 }
   0x7   : > { %181 = sbr.rel (%p178_p3) target bundleno = 703 (0x2bf), region = 28 }
   0xe   : > { %p211_p4 = scmp.lt.s32.totalorder %s3511_s12, 1  ;;  %vm265_vm0 = vcmask 64512  }
  0x10   : > { %s4258_s12 = smov (!%p211_p4, %s3511_s12), 1 }
  0x11   : > { %s2788_s16 = sshll.u32 %s4258_s12, 3  ;;  %s227_s25 = scalar_lea.vmem %s4143_s2, %s4258_s12 }
  0x12   : > { %s224_s19 = scalar_lea.vmem %s4142_s1, %s2788_s16  ;;  %s217_s22 = scalar_lea.vmem %s4141_s0, %s2788_s16 }
  0x13   : > { %v232_v0 = vld [vmem:[%s224_s19] sm:$0xff]  ;;  %s230_s28 = scalar_lea.vmem %s4144_s3, %s4258_s12 }
  0x14   : > { %233 = vxpose.xlu0.b32.start.end [1/1] (short) %v232_v0, 128  ;;  %v3568_v1 = vand.u32 4294901760, %v232_v0  ;;  %v231_v2 = vld [vmem:[%s217_s22] sm:$0xff] }
  0x15   : > { %v3570_v3 = vand.u32 4294901760, %v231_v2 }
  0x16   : > { %3152 = vmatprep.subr.mxu1 %v3568_v1  ;;  %v3585_v8 = vsub.f32 %v232_v0, %v3568_v1 }
  0x17   : > { %2996 = vmatprep.subr.mxu0 %v3570_v3  ;;  %3153 = vmatpush3.msra.mxu1 %v3568_v1  ;;  %v3577_v4 = vsub.f32 %v231_v2, %v3570_v3 }
  0x18   : > { %2997 = vmatpush3.msra.mxu0 %v3570_v3  ;;  %v3588_v9 = vand.u32 4294901760, %v3585_v8 }
  0x19   : > { %v3580_v5 = vand.u32 4294901760, %v3577_v4 }
  0x1a   : > { %v1736_v10 = vsub.f32 %v3585_v8, %v3588_v9 }
  0x1b   : > { %v544_v6 = vsub.f32 %v3577_v4, %v3580_v5 }
  0x1c   : > { %v3592_v11 = vand.u32 4294901760, %v1736_v10 }
  0x1d   : > { %v545_v7 = vand.u32 4294901760, %v544_v6 }
  0x1e   : > { %3178 = vmatprep.subr.mxu1 %v3592_v11 }
  0x1f   : > { %3022 = vmatprep.subr.mxu0 %v545_v7 }
  0x51   : > { %1426 = vxpose.xlu0.b32.start.end [1/1] (short) %v231_v2, 128 }
  0x94   : > { %v249_v12 = vpop.trf.xlu0 }
  0x95   : > { %v267_v13 = vsel %vm265_vm0, %v249_v12, 0 }
  0x96   : > { %v3596_v14 = vand.u32 4294901760, %v267_v13 }
  0x98   : > { %v3599_v15 = vsub.f32 %v267_v13, %v3596_v14  ;;  %v250_v16 = vpop.trf.xlu0 }
  0x99   : > { %v270_v17 = vsel %vm265_vm0, %v250_v16, 0 }
  0x9a   : > { %v3602_v18 = vand.u32 4294901760, %v270_v17  ;;  %v4167_v19 = vand.u32 4294901760, %v3599_v15 }
  0x9c   : > { %v3606_v20 = vsub.f32 %v270_v17, %v3602_v18  ;;  %v251_v21 = vpop.trf.xlu0  ;;  %v383_v22 = vsub.f32 %v3599_v15, %v4167_v19 }
  0x9d   : > { %v273_v23 = vsel %vm265_vm0, %v251_v21, 0 }
  0x9e   : > { %v4166_v24 = vand.u32 4294901760, %v3606_v20  ;;  %v3613_v25 = vand.u32 4294901760, %v273_v23  ;;  %v384_v26 = vand.u32 4294901760, %v383_v22 }
  0xa0   : > { %v3616_v27 = vsub.f32 %v273_v23, %v3613_v25  ;;  %2998 = vmatprep.mubr.f32.mxu0 %v384_v26  ;;  %v252_v28 = vpop.trf.xlu0  ;;  %v393_v29 = vsub.f32 %v3606_v20, %v4166_v24 }
  0xa1   : > { %v276_v30 = vsel %vm265_vm0, %v252_v28, 0 }
  0xa2   : > { %v4164_v31 = vand.u32 4294901760, %v3616_v27  ;;  %v3623_v32 = vand.u32 4294901760, %v276_v30  ;;  %v394_v33 = vand.u32 4294901760, %v393_v29 }
  0xa4   : > { %v3626_v34 = vsub.f32 %v276_v30, %v3623_v32  ;;  %v253_v35 = vpop.trf.xlu0  ;;  %2999 = vmatmul.mubr.f32.vlgmr.msra.gmra.mrb[0].mxu0 %v394_v33  ;;  %v403_v36 = vsub.f32 %v3616_v27, %v4164_v31 }
  0xa5   : > { %v279_v37 = vsel %vm265_vm0, %v253_v35, 0  ;;  %3023 = vmatpush3.msra.mxu0 %v545_v7 }
  0xa6   : > { %v4163_v38 = vand.u32 4294901760, %v3626_v34  ;;  %v3633_v39 = vand.u32 4294901760, %v279_v37  ;;  %v404_v40 = vand.u32 4294901760, %v403_v36  ;;  %3048 = vmatprep.subr.mxu0 %v3577_v4 }
  0xa8   : > { %v3637_v41 = vsub.f32 %v279_v37, %v3633_v39  ;;  %v254_v42 = vpop.trf.xlu0  ;;  %3001 = vmatprep.mubr.f32.mxu0 %v404_v40  ;;  %v413_v43 = vsub.f32 %v3626_v34, %v4163_v38 }
  0xa9   : > { %v282_v44 = vsel %vm265_vm0, %v254_v42, 0 }
  0xaa   : > { %v4161_v45 = vand.u32 4294901760, %v3637_v41  ;;  %v3644_v46 = vand.u32 4294901760, %v282_v44  ;;  %v414_v47 = vand.u32 4294901760, %v413_v43 }
  0xac   : > { %v3647_v48 = vsub.f32 %v282_v44, %v3644_v46  ;;  %v255_v49 = vpop.trf.xlu0  ;;  %3002 = vmatmul.mubr.f32.gmra.mrb[2].mxu0 %v414_v47  ;;  %v423_v50 = vsub.f32 %v3637_v41, %v4161_v45 }
  0xad   : > { %v285_v51 = vsel %vm265_vm0, %v255_v49, 0 }
  0xae   : > { %v4160_v52 = vand.u32 4294901760, %v3647_v48  ;;  %v3654_v53 = vand.u32 4294901760, %v285_v51  ;;  %v424_v54 = vand.u32 4294901760, %v423_v50 }
  0xb0   : > { %v3657_v55 = vsub.f32 %v285_v51, %v3654_v53  ;;  %v256_v56 = vpop.trf.xlu0  ;;  %3004 = vmatprep.mubr.f32.mxu0 %v424_v54  ;;  %v433_v57 = vsub.f32 %v3647_v48, %v4160_v52 }
  0xb1   : > { %v288_v58 = vsel %vm265_vm0, %v256_v56, 0 }
  0xb2   : > { %v4158_v59 = vand.u32 4294901760, %v3657_v55  ;;  %v3664_v60 = vand.u32 4294901760, %v288_v58  ;;  %v434_v61 = vand.u32 4294901760, %v433_v57 }
  0xb4   : > { %v3667_v62 = vsub.f32 %v288_v58, %v3664_v60  ;;  %v257_v63 = vpop.trf.xlu0  ;;  %3005 = vmatmul.mubr.f32.gmra.mrb[4].mxu0 %v434_v61  ;;  %v443_v0 = vsub.f32 %v3657_v55, %v4158_v59 }
  0xb5   : > { %v291_v2 = vsel %vm265_vm0, %v257_v63, 0 }
  0xb6   : > { %v4157_v6 = vand.u32 4294901760, %v3667_v62  ;;  %v3674_v7 = vand.u32 4294901760, %v291_v2  ;;  %v444_v10 = vand.u32 4294901760, %v443_v0 }
  0xb8   : > { %v3677_v12 = vsub.f32 %v291_v2, %v3674_v7  ;;  %v258_v13 = vpop.trf.xlu0  ;;  %3007 = vmatprep.mubr.f32.mxu0 %v444_v10  ;;  %v453_v16 = vsub.f32 %v3667_v62, %v4157_v6 }
  0xb9   : > { %v294_v17 = vsel %vm265_vm0, %v258_v13, 0 }
  0xba   : > { %v4155_v21 = vand.u32 4294901760, %v3677_v12  ;;  %v3684_v22 = vand.u32 4294901760, %v294_v17  ;;  %v454_v23 = vand.u32 4294901760, %v453_v16 }
  0xbc   : > { %4199 = vst [vmem:[#allocation2_spill] sm:$0xff] %v3684_v22  ;;  %v3687_v26 = vsub.f32 %v294_v17, %v3684_v22  ;;  %v259_v28 = vpop.trf.xlu0  ;;  %3008 = vmatmul.mubr.f32.gmra.mrb[6].mxu0 %v454_v23  ;;  %v463_v29 = vsub.f32 %v3677_v12, %v4155_v21 }
  0xbd   : > { %v297_v30 = vsel %vm265_vm0, %v259_v28, 0 }
  0xbe   : > { %v4153_v33 = vand.u32 4294901760, %v3687_v26  ;;  %v3694_v35 = vand.u32 4294901760, %v297_v30  ;;  %v464_v36 = vand.u32 4294901760, %v463_v29 }
  0xc0   : > { %4200 = vst [vmem:[#allocation3_spill] sm:$0xff] %v3694_v35  ;;  %v3697_v37 = vsub.f32 %v297_v30, %v3694_v35  ;;  %v260_v40 = vpop.trf.xlu0  ;;  %3010 = vmatprep.mubr.f32.mxu0 %v464_v36  ;;  %v473_v42 = vsub.f32 %v3687_v26, %v4153_v33 }
  0xc1   : > { %v300_v43 = vsel %vm265_vm0, %v260_v40, 0 }
  0xc2   : > { %v4151_v44 = vand.u32 4294901760, %v3697_v37  ;;  %v3704_v47 = vand.u32 4294901760, %v300_v43  ;;  %v474_v49 = vand.u32 4294901760, %v473_v42 }
  0xc4   : > { %4201 = vst [vmem:[#allocation4_spill] sm:$0xff] %v3704_v47  ;;  %v3707_v50 = vsub.f32 %v300_v43, %v3704_v47  ;;  %v261_v51 = vpop.trf.xlu0  ;;  %3011 = vmatmul.mubr.f32.gmra.mrb[8].mxu0 %v474_v49  ;;  %v483_v54 = vsub.f32 %v3697_v37, %v4151_v44 }
  0xc5   : > { %v303_v56 = vsel %vm265_vm0, %v261_v51, 0 }
  0xc6   : > { %v4149_v57 = vand.u32 4294901760, %v3707_v50  ;;  %v3714_v58 = vand.u32 4294901760, %v303_v56  ;;  %v484_v61 = vand.u32 4294901760, %v483_v54 }
  0xc8   : > { %4202 = vst [vmem:[#allocation5_spill] sm:$0xff] %v3714_v58  ;;  %v3717_v63 = vsub.f32 %v303_v56, %v3714_v58  ;;  %v262_v0 = vpop.trf.xlu0  ;;  %3013 = vmatprep.mubr.f32.mxu0 %v484_v61  ;;  %v493_v2 = vsub.f32 %v3707_v50, %v4149_v57 }
  0xc9   : > { %v306_v10 = vsel %vm265_vm0, %v262_v0, 0 }
  0xca   : > { %v4147_v13 = vand.u32 4294901760, %v3717_v63  ;;  %v3724_v16 = vand.u32 4294901760, %v306_v10  ;;  %v494_v17 = vand.u32 4294901760, %v493_v2 }
  0xcc   : > { %4203 = vst [vmem:[#allocation6_spill] sm:$0xff] %v3724_v16  ;;  %v3727_v23 = vsub.f32 %v306_v10, %v3724_v16  ;;  %v263_v28 = vpop.trf.xlu0  ;;  %3014 = vmatmul.mubr.f32.gmra.mrb[10].mxu0 %v494_v17  ;;  %v503_v29 = vsub.f32 %v3717_v63, %v4147_v13 }
  0xcd   : > { %v309_v30 = vsel %vm265_vm0, %v263_v28, 0 }
  0xce   : > { %v4145_v36 = vand.u32 4294901760, %v3727_v23  ;;  %v3734_v40 = vand.u32 4294901760, %v309_v30  ;;  %v504_v42 = vand.u32 4294901760, %v503_v29 }
  0xd0   : > { %4204 = vst [vmem:[#allocation7_spill] sm:$0xff] %v3734_v40  ;;  %v3737_v43 = vsub.f32 %v309_v30, %v3734_v40  ;;  %v264_v49 = vpop.trf.xlu0  ;;  %3016 = vmatprep.mubr.f32.mxu0 %v504_v42  ;;  %v513_v51 = vsub.f32 %v3727_v23, %v4145_v36 }
  0xd1   : > { %v312_v54 = vsel %vm265_vm0, %v264_v49, 0 }
  0xd2   : > { %v4146_v56 = vand.u32 4294901760, %v3737_v43  ;;  %v3744_v61 = vand.u32 4294901760, %v312_v54  ;;  %v514_v0 = vand.u32 4294901760, %v513_v51 }
  0xd4   : > { %4205 = vst [vmem:[#allocation8_spill] sm:$0xff] %v3744_v61  ;;  %v3747_v2 = vsub.f32 %v312_v54, %v3744_v61  ;;  %v1442_v10 = vpop.trf.xlu0  ;;  %3017 = vmatmul.mubr.f32.gmra.mrb[12].mxu0 %v514_v0  ;;  %v523_v17 = vsub.f32 %v3737_v43, %v4146_v56 }
  0xd5   : > { %v1459_v28 = vsel %vm265_vm0, %v1442_v10, 0 }
  0xd6   : > { %v4148_v29 = vand.u32 4294901760, %v3747_v2  ;;  %v3754_v30 = vand.u32 4294901760, %v1459_v28  ;;  %v524_v42 = vand.u32 4294901760, %v523_v17 }
  0xd8   : > { %v3757_v49 = vsub.f32 %v1459_v28, %v3754_v30  ;;  %v1443_v51 = vpop.trf.xlu0  ;;  %3019 = vmatprep.mubr.f32.mxu0 %v524_v42  ;;  %v533_v54 = vsub.f32 %v3747_v2, %v4148_v29 }
  0xd9   : > { %v1462_v0 = vsel %vm265_vm0, %v1443_v51, 0 }
  0xda   : > { %v3763_v36 = vand.u32 4294901760, %v1462_v0  ;;  %v534_v56 = vand.u32 4294901760, %v533_v54  ;;  %v4150_v10 = vand.u32 4294901760, %v3757_v49 }
  0xdc   : > { %v3767_v13 = vsub.f32 %v1462_v0, %v3763_v36  ;;  %v1444_v17 = vpop.trf.xlu0  ;;  %3020 = vmatmul.mubr.f32.gmra.mrb[14].mxu0 %v534_v56  ;;  %v1575_v28 = vsub.f32 %v3757_v49, %v4150_v10 }
  0xdd   : > { %v1465_v42 = vsel %vm265_vm0, %v1444_v17, 0  ;;  %3024 = vmatprep.mubr.f32.mxu0 %v3596_v14 }
  0xde   : > { %v4152_v51 = vand.u32 4294901760, %v3767_v13  ;;  %v3775_v29 = vand.u32 4294901760, %v1465_v42  ;;  %v1576_v54 = vand.u32 4294901760, %v1575_v28 }
  0xe0   : > { %v3778_v57 = vsub.f32 %v1465_v42, %v3775_v29  ;;  %3154 = vmatprep.mubr.f32.mxu1 %v1576_v54  ;;  %v1445_v0 = vpop.trf.xlu0  ;;  %3025 = vmatmul.mubr.f32.vlgmr.msra.gmra.mrb[0].mxu0 %v3602_v18  ;;  %v1585_v56 = vsub.f32 %v3767_v13, %v4152_v51 }
  0xe1   : > { %v1468_v17 = vsel %vm265_vm0, %v1445_v0, 0  ;;  %3027 = vmatprep.mubr.f32.mxu0 %v3613_v25  ;;  %3049 = vmatpush3.msra.mxu0 %v3577_v4 }
  0xe2   : > { %v4154_v10 = vand.u32 4294901760, %v3778_v57  ;;  %v3788_v28 = vand.u32 4294901760, %v1468_v17  ;;  %v1586_v42 = vand.u32 4294901760, %v1585_v56  ;;  %3074 = vmatprep.subr.mxu0 %v3570_v3 }
  0xe4   : > { %v3792_v54 = vsub.f32 %v1468_v17, %v3788_v28  ;;  %3155 = vmatmul.mubr.f32.vlgmr.msra.gmra.mrb[0].mxu1 %v1586_v42  ;;  %v1446_v44 = vpop.trf.xlu0  ;;  %3028 = vmatmul.mubr.f32.gmra.mrb[2].mxu0 %v3623_v32  ;;  %v1595_v0 = vsub.f32 %v3778_v57, %v4154_v10 }
  0xe5   : > { %v1471_v4 = vsel %vm265_vm0, %v1446_v44, 0  ;;  %3030 = vmatprep.mubr.f32.mxu0 %v3633_v39  ;;  %3179 = vmatpush3.msra.mxu1 %v3592_v11 }
  0xe6   : > { %v4156_v56 = vand.u32 4294901760, %v3792_v54  ;;  %v3802_v51 = vand.u32 4294901760, %v1471_v4  ;;  %v1596_v17 = vand.u32 4294901760, %v1595_v0  ;;  %3204 = vmatprep.subr.mxu1 %v3585_v8 }
  0xe8   : > { %v3806_v42 = vsub.f32 %v1471_v4, %v3802_v51  ;;  %3157 = vmatprep.mubr.f32.mxu1 %v1596_v17  ;;  %v1447_v33 = vpop.trf.xlu0  ;;  %3031 = vmatmul.mubr.f32.gmra.mrb[4].mxu0 %v3644_v46  ;;  %v1605_v44 = vsub.f32 %v3792_v54, %v4156_v56 }
  0xe9   : > { %v1474_v11 = vsel %vm265_vm0, %v1447_v33, 0  ;;  %3033 = vmatprep.mubr.f32.mxu0 %v3654_v53 }
  0xea   : > { %v4159_v10 = vand.u32 4294901760, %v3806_v42  ;;  %v3815_v0 = vand.u32 4294901760, %v1474_v11  ;;  %v1606_v21 = vand.u32 4294901760, %v1605_v44 }
  0xec   : > { %v3818_v4 = vsub.f32 %v1474_v11, %v3815_v0  ;;  %3158 = vmatmul.mubr.f32.gmra.mrb[2].mxu1 %v1606_v21  ;;  %v1448_v17 = vpop.trf.xlu0  ;;  %3034 = vmatmul.mubr.f32.gmra.mrb[6].mxu0 %v3664_v60  ;;  %v1615_v56 = vsub.f32 %v3806_v42, %v4159_v10 }
  0xed   : > { %v1477_v33 = vsel %vm265_vm0, %v1448_v17, 0  ;;  %3036 = vmatprep.mubr.f32.mxu0 %v3674_v7 }
  0xee   : > { %v4162_v6 = vand.u32 4294901760, %v3818_v4  ;;  %v3827_v59 = vand.u32 4294901760, %v1477_v33  ;;  %v1616_v44 = vand.u32 4294901760, %v1615_v56 }
  0xf0   : > { %v3830_v11 = vsub.f32 %v1477_v33, %v3827_v59  ;;  %3160 = vmatprep.mubr.f32.mxu1 %v1616_v44  ;;  %v1449_v21 = vpop.trf.xlu0  ;;  %3037 = vmatmul.mubr.f32.gmra.mrb[8].mxu0 %v3684_v22  ;;  %v1625_v10 = vsub.f32 %v3818_v4, %v4162_v6 }
  0xf1   : > { %v1480_v17 = vsel %vm265_vm0, %v1449_v21, 0  ;;  %3039 = vmatprep.mubr.f32.mxu0 %v3694_v35 }
  0xf2   : > { %v4165_v52 = vand.u32 4294901760, %v3830_v11  ;;  %v3839_v45 = vand.u32 4294901760, %v1480_v17  ;;  %v1626_v56 = vand.u32 4294901760, %v1625_v10 }
  0xf4   : > { %v3842_v33 = vsub.f32 %v1480_v17, %v3839_v45  ;;  %3161 = vmatmul.mubr.f32.gmra.mrb[4].mxu1 %v1626_v56  ;;  %v1450_v44 = vpop.trf.xlu0  ;;  %3040 = vmatmul.mubr.f32.gmra.mrb[10].mxu0 %v3704_v47  ;;  %v1635_v6 = vsub.f32 %v3830_v11, %v4165_v52 }
  0xf5   : > { %v1483_v21 = vsel %vm265_vm0, %v1450_v44, 0  ;;  %3042 = vmatprep.mubr.f32.mxu0 %v3714_v58 }
  0xf6   : > { %v4168_v38 = vand.u32 4294901760, %v3842_v33  ;;  %v3851_v31 = vand.u32 4294901760, %v1483_v21  ;;  %v1636_v10 = vand.u32 4294901760, %v1635_v6 }
  0xf8   : > { %v3854_v17 = vsub.f32 %v1483_v21, %v3851_v31  ;;  %3163 = vmatprep.mubr.f32.mxu1 %v1636_v10  ;;  %v1451_v56 = vpop.trf.xlu0  ;;  %3043 = vmatmul.mubr.f32.gmra.mrb[12].mxu0 %v3724_v16  ;;  %v1645_v52 = vsub.f32 %v3842_v33, %v4168_v38 }
  0xf9   : > { %v1486_v44 = vsel %vm265_vm0, %v1451_v56, 0  ;;  %3045 = vmatprep.mubr.f32.mxu0 %v3734_v40 }
  0xfa   : > { %4206 = vst [vmem:[#allocation9_spill] sm:$0xff] %v3854_v17  ;;  %v4173_v24 = vand.u32 4294901760, %v3854_v17  ;;  %v3863_v19 = vand.u32 4294901760, %v1486_v44  ;;  %v1646_v6 = vand.u32 4294901760, %v1645_v52 }
  0xfc   : > { %v3866_v21 = vsub.f32 %v1486_v44, %v3863_v19  ;;  %3164 = vmatmul.mubr.f32.gmra.mrb[6].mxu1 %v1646_v6  ;;  %v1452_v10 = vpop.trf.xlu0  ;;  %3046 = vmatmul.mubr.f32.gmra.mrb[14].mxu0 %v3744_v61  ;;  %v1655_v38 = vsub.f32 %v3854_v17, %v4173_v24 }
  0xfd   : > { %v1489_v56 = vsel %vm265_vm0, %v1452_v10, 0  ;;  %3050 = vmatprep.mubr.f32.mxu0 %v3599_v15 }
  0xfe   : > { %4207 = vst [vmem:[#allocation10_spill] sm:$0xff] %v3866_v21  ;;  %v4178_v40 = vand.u32 4294901760, %v3866_v21  ;;  %v3875_v16 = vand.u32 4294901760, %v1489_v56  ;;  %v1656_v52 = vand.u32 4294901760, %v1655_v38 }
 0x100   : > { %v3878_v44 = vsub.f32 %v1489_v56, %v3875_v16  ;;  %3166 = vmatprep.mubr.f32.mxu1 %v1656_v52  ;;  %v1453_v6 = vpop.trf.xlu0  ;;  %3051 = vmatmul.mubr.f32.vlgmr.msra.gmra.mrb[0].mxu0 %v3606_v20  ;;  %v1665_v24 = vsub.f32 %v3866_v21, %v4178_v40 }
 0x101   : > { %v1492_v10 = vsel %vm265_vm0, %v1453_v6, 0  ;;  %3053 = vmatprep.mubr.f32.mxu0 %v3616_v27  ;;  %3075 = vmatpush3.msra.mxu0 %v3570_v3 }
 0x102   : > { %4208 = vst [vmem:[#allocation11_spill] sm:$0xff] %v3878_v44  ;;  %v4183_v61 = vand.u32 4294901760, %v3878_v44  ;;  %v3888_v38 = vand.u32 4294901760, %v1492_v10  ;;  %v1666_v56 = vand.u32 4294901760, %v1665_v24  ;;  %3100 = vmatprep.subr.mxu0 %v3580_v5 }
 0x104   : > { %v3892_v52 = vsub.f32 %v1492_v10, %v3888_v38  ;;  %3167 = vmatmul.mubr.f32.gmra.mrb[8].mxu1 %v1666_v56  ;;  %v1454_v58 = vpop.trf.xlu0  ;;  %3054 = vmatmul.mubr.f32.gmra.mrb[2].mxu0 %v3626_v34  ;;  %v1675_v6 = vsub.f32 %v3878_v44, %v4183_v61 }
 0x105   : > { %v1495_v40 = vsel %vm265_vm0, %v1454_v58, 0  ;;  %3056 = vmatprep.mubr.f32.mxu0 %v3637_v41 }
 0x106   : > { %4209 = vst [vmem:[#allocation12_spill] sm:$0xff] %v3892_v52  ;;  %v4188_v47 = vand.u32 4294901760, %v3892_v52  ;;  %v3901_v24 = vand.u32 4294901760, %v1495_v40  ;;  %v1676_v35 = vand.u32 4294901760, %v1675_v6 }
 0x108   : > { %v3904_v10 = vsub.f32 %v1495_v40, %v3901_v24  ;;  %3169 = vmatprep.mubr.f32.mxu1 %v1676_v35  ;;  %v1455_v56 = vpop.trf.xlu0  ;;  %3057 = vmatmul.mubr.f32.gmra.mrb[4].mxu0 %v3647_v48  ;;  %v1685_v61 = vsub.f32 %v3892_v52, %v4188_v47 }
 0x109   : > { %v1498_v58 = vsel %vm265_vm0, %v1455_v56, 0  ;;  %3059 = vmatprep.mubr.f32.mxu0 %v3657_v55 }
 0x10a   : > { %4210 = vst [vmem:[#allocation13_spill] sm:$0xff] %v3904_v10  ;;  %v4193_v44 = vand.u32 4294901760, %v3904_v10  ;;  %v3913_v21 = vand.u32 4294901760, %v1498_v58  ;;  %v1686_v6 = vand.u32 4294901760, %v1685_v61 }
 0x10c   : > { %v3916_v40 = vsub.f32 %v1498_v58, %v3913_v21  ;;  %3170 = vmatmul.mubr.f32.gmra.mrb[10].mxu1 %v1686_v6  ;;  %v1456_v35 = vpop.trf.xlu0  ;;  %3060 = vmatmul.mubr.f32.gmra.mrb[6].mxu0 %v3667_v62  ;;  %v1695_v47 = vsub.f32 %v3904_v10, %v4193_v44 }
 0x10d   : > { %v1501_v56 = vsel %vm265_vm0, %v1456_v35, 0  ;;  %3062 = vmatprep.mubr.f32.mxu0 %v3677_v12 }
 0x10e   : > { %v4198_v52 = vand.u32 4294901760, %v3916_v40  ;;  %v3925_v22 = vand.u32 4294901760, %v1501_v56  ;;  %v1696_v61 = vand.u32 4294901760, %v1695_v47 }
 0x110   : > { %v3928_v58 = vsub.f32 %v1501_v56, %v3925_v22  ;;  %3172 = vmatprep.mubr.f32.mxu1 %v1696_v61  ;;  %v1457_v6 = vpop.trf.xlu0  ;;  %3063 = vmatmul.mubr.f32.gmra.mrb[8].mxu0 %v3687_v26  ;;  %v1705_v44 = vsub.f32 %v3916_v40, %v4198_v52 }
 0x111   : > { %v1504_v35 = vsel %vm265_vm0, %v1457_v6, 0  ;;  %3065 = vmatprep.mubr.f32.mxu0 %v3697_v37 }
 0x112   : > { %v1714_v10 = vand.u32 4294901760, %v3928_v58  ;;  %v3937_v17 = vand.u32 4294901760, %v1504_v35  ;;  %v1706_v47 = vand.u32 4294901760, %v1705_v44 }
 0x114   : > { %v3940_v56 = vsub.f32 %v1504_v35, %v3937_v17  ;;  %3066 = vmatmul.mubr.f32.gmra.mrb[10].mxu0 %v3707_v50  ;;  %3173 = vmatmul.mubr.f32.gmra.mrb[12].mxu1 %v1706_v47  ;;  %v1715_v61 = vsub.f32 %v3928_v58, %v1714_v10  ;;  %v4211_v47 = vand.u32 4294901760, %v3599_v15  ;;  %v4214_v15 = vand.u32 4294901760, %v3626_v34 }
 0x115   : > { %3068 = vmatprep.mubr.f32.mxu0 %v3717_v63  ;;  %v4219_v34 = vand.u32 4294901760, %v3677_v12  ;;  %v4224_v12 = vand.u32 4294901760, %v3727_v23 }
 0x116   : > { %v1724_v6 = vand.u32 4294901760, %v3940_v56  ;;  %v1716_v52 = vand.u32 4294901760, %v1715_v61  ;;  %v4212_v61 = vand.u32 4294901760, %v3606_v20  ;;  %v4215_v20 = vand.u32 4294901760, %v3637_v41 }
 0x117   : > { %v4220_v41 = vand.u32 4294901760, %v3687_v26  ;;  %v4225_v26 = vand.u32 4294901760, %v3737_v43 }
 0x118   : > { %3069 = vmatmul.mubr.f32.gmra.mrb[12].mxu0 %v3727_v23  ;;  %3175 = vmatprep.mubr.f32.mxu1 %v1716_v52  ;;  %v1725_v44 = vsub.f32 %v3940_v56, %v1724_v6  ;;  %v4213_v52 = vand.u32 4294901760, %v3616_v27  ;;  %v4218_v27 = vand.u32 4294901760, %v3667_v62  ;;  %v4223_v62 = vand.u32 4294901760, %v3717_v63  ;;  %v4229_v63 = vld [vmem:[#allocation10_spill] sm:$0xff]  ;;  %v4230_v23 = vld [vmem:[#allocation3_spill] sm:$0xff] }
 0x119   : > { %3071 = vmatprep.mubr.f32.mxu0 %v3737_v43  ;;  %v4231_v43 = vld [vmem:[#allocation11_spill] sm:$0xff] }
 0x11a   : > { %v1726_v35 = vand.u32 4294901760, %v1725_v44  ;;  %v4233_v44 = vld [vmem:[#allocation12_spill] sm:$0xff] }
 0x11c   : > { %3072 = vmatmul.mubr.f32.gmra.mrb[14].mxu0 %v3747_v2  ;;  %3176 = vmatmul.mubr.f32.gmra.mrb[14].mxu1 %v1726_v35  ;;  %v4234_v35 = vld [vmem:[#allocation5_spill] sm:$0xff] }
 0x11d   : > { %3076 = vmatprep.mubr.f32.mxu0 %v4211_v47  ;;  %3180 = vmatprep.mubr.f32.mxu1 %v3754_v30  ;;  %v4235_v47 = vld [vmem:[#allocation13_spill] sm:$0xff] }
 0x120   : > { %3077 = vmatmul.mubr.f32.vlgmr.msra.gmra.mrb[0].mxu0 %v4212_v61  ;;  %3181 = vmatmul.mubr.f32.vlgmr.msra.gmra.mrb[0].mxu1 %v3763_v36  ;;  %v4236_v61 = vld [vmem:[#allocation6_spill] sm:$0xff] }
 0x121   : > { %3205 = vmatpush3.msra.mxu1 %v3585_v8  ;;  %3079 = vmatprep.mubr.f32.mxu0 %v4213_v52  ;;  %v4216_v8 = vand.u32 4294901760, %v3647_v48  ;;  %v4221_v48 = vand.u32 4294901760, %v3697_v37  ;;  %v4226_v37 = vand.u32 4294901760, %v3747_v2  ;;  %v4232_v2 = vld [vmem:[#allocation4_spill] sm:$0xff]  ;;  %v4237_v52 = vld [vmem:[#allocation7_spill] sm:$0xff] }
 0x122   : > { %3183 = vmatprep.mubr.f32.mxu1 %v3775_v29  ;;  %3101 = vmatpush3.msra.mxu0 %v3580_v5  ;;  %v4217_v5 = vand.u32 4294901760, %v3657_v55  ;;  %v4222_v55 = vand.u32 4294901760, %v3707_v50  ;;  %v4228_v50 = vld [vmem:[#allocation2_spill] sm:$0xff] }
 0x123   : > { %3230 = vmatprep.subr.mxu1 %v3568_v1  ;;  %3126 = vmatprep.subr.mxu0 %v3570_v3 }
 0x124   : > { %3080 = vmatmul.mubr.f32.gmra.mrb[2].mxu0 %v4214_v15  ;;  %3184 = vmatmul.mubr.f32.gmra.mrb[2].mxu1 %v3788_v28  ;;  %v4238_v15 = vld [vmem:[#allocation8_spill] sm:$0xff] }
 0x125   : > { %3082 = vmatprep.mubr.f32.mxu0 %v4215_v20  ;;  %3186 = vmatprep.mubr.f32.mxu1 %v3802_v51  ;;  %v4239_v20 = vand.u32 4294901760, %v3757_v49 }
 0x128   : > { %3083 = vmatmul.mubr.f32.gmra.mrb[4].mxu0 %v4216_v8  ;;  %3187 = vmatmul.mubr.f32.gmra.mrb[4].mxu1 %v3815_v0  ;;  %v4240_v8 = vand.u32 4294901760, %v3767_v13 }
 0x129   : > { %3085 = vmatprep.mubr.f32.mxu0 %v4217_v5  ;;  %3189 = vmatprep.mubr.f32.mxu1 %v3827_v59  ;;  %v4241_v5 = vand.u32 4294901760, %v3778_v57 }
 0x12c   : > { %3086 = vmatmul.mubr.f32.gmra.mrb[6].mxu0 %v4218_v27  ;;  %3190 = vmatmul.mubr.f32.gmra.mrb[6].mxu1 %v3839_v45 }
 0x12d   : > { %3088 = vmatprep.mubr.f32.mxu0 %v4219_v34  ;;  %3192 = vmatprep.mubr.f32.mxu1 %v3851_v31 }
 0x130   : > { %3089 = vmatmul.mubr.f32.gmra.mrb[8].mxu0 %v4220_v41  ;;  %3193 = vmatmul.mubr.f32.gmra.mrb[8].mxu1 %v3863_v19 }
 0x131   : > { %3091 = vmatprep.mubr.f32.mxu0 %v4221_v48  ;;  %3195 = vmatprep.mubr.f32.mxu1 %v3875_v16 }
 0x134   : > { %3092 = vmatmul.mubr.f32.gmra.mrb[10].mxu0 %v4222_v55  ;;  %3196 = vmatmul.mubr.f32.gmra.mrb[10].mxu1 %v3888_v38 }
 0x135   : > { %3094 = vmatprep.mubr.f32.mxu0 %v4223_v62  ;;  %3198 = vmatprep.mubr.f32.mxu1 %v3901_v24 }
 0x138   : > { %3095 = vmatmul.mubr.f32.gmra.mrb[12].mxu0 %v4224_v12  ;;  %3199 = vmatmul.mubr.f32.gmra.mrb[12].mxu1 %v3913_v21 }
 0x139   : > { %3097 = vmatprep.mubr.f32.mxu0 %v4225_v26  ;;  %3201 = vmatprep.mubr.f32.mxu1 %v3925_v22 }
 0x13c   : > { %3098 = vmatmul.mubr.f32.gmra.mrb[14].mxu0 %v4226_v37  ;;  %3202 = vmatmul.mubr.f32.gmra.mrb[14].mxu1 %v3937_v17 }
 0x13d   : > { %3102 = vmatprep.mubr.f32.mxu0 %v3596_v14  ;;  %3206 = vmatprep.mubr.f32.mxu1 %v3757_v49 }
 0x140   : > { %3103 = vmatmul.mubr.f32.vlgmr.msra.gmra.mrb[0].mxu0 %v3602_v18  ;;  %3207 = vmatmul.mubr.f32.vlgmr.msra.gmra.mrb[0].mxu1 %v3767_v13 }
 0x141   : > { %3231 = vmatpush3.msra.mxu1 %v3568_v1  ;;  %3105 = vmatprep.mubr.f32.mxu0 %v3613_v25 }
 0x142   : > { %3209 = vmatprep.mubr.f32.mxu1 %v3778_v57  ;;  %3127 = vmatpush3.msra.mxu0 %v3570_v3  ;;  %v4227_v3 = vld [vmem:[#allocation9_spill] sm:$0xff]  ;;  %v4252_v57 = vand.u32 4294901760, %v3916_v40 }
 0x143   : > { %3256 = vmatprep.subr.mxu1 %v3588_v9 }
 0x144   : > { %3106 = vmatmul.mubr.f32.gmra.mrb[2].mxu0 %v3623_v32  ;;  %3210 = vmatmul.mubr.f32.gmra.mrb[2].mxu1 %v3792_v54 }
 0x145   : > { %3108 = vmatprep.mubr.f32.mxu0 %v3633_v39  ;;  %3212 = vmatprep.mubr.f32.mxu1 %v3806_v42 }
 0x148   : > { %3109 = vmatmul.mubr.f32.gmra.mrb[4].mxu0 %v3644_v46  ;;  %3213 = vmatmul.mubr.f32.gmra.mrb[4].mxu1 %v3818_v4 }
 0x149   : > { %3111 = vmatprep.mubr.f32.mxu0 %v3654_v53  ;;  %3215 = vmatprep.mubr.f32.mxu1 %v3830_v11 }
 0x14c   : > { %3112 = vmatmul.mubr.f32.gmra.mrb[6].mxu0 %v3664_v60  ;;  %3216 = vmatmul.mubr.f32.gmra.mrb[6].mxu1 %v3842_v33 }
 0x14d   : > { %3114 = vmatprep.mubr.f32.mxu0 %v3674_v7  ;;  %3218 = vmatprep.mubr.f32.mxu1 %v4227_v3 }
 0x150   : > { %3115 = vmatmul.mubr.f32.gmra.mrb[8].mxu0 %v4228_v50  ;;  %3219 = vmatmul.mubr.f32.gmra.mrb[8].mxu1 %v4229_v63 }
 0x151   : > { %3117 = vmatprep.mubr.f32.mxu0 %v4230_v23  ;;  %3221 = vmatprep.mubr.f32.mxu1 %v4231_v43 }
 0x154   : > { %3118 = vmatmul.mubr.f32.gmra.mrb[10].mxu0 %v4232_v2  ;;  %3222 = vmatmul.mubr.f32.gmra.mrb[10].mxu1 %v4233_v44 }
 0x155   : > { %3120 = vmatprep.mubr.f32.mxu0 %v4234_v35  ;;  %3224 = vmatprep.mubr.f32.mxu1 %v4235_v47 }
 0x158   : > { %3121 = vmatmul.mubr.f32.gmra.mrb[12].mxu0 %v4236_v61  ;;  %3225 = vmatmul.mubr.f32.gmra.mrb[12].mxu1 %v3916_v40 }
 0x159   : > { %3123 = vmatprep.mubr.f32.mxu0 %v4237_v52  ;;  %3227 = vmatprep.mubr.f32.mxu1 %v3928_v58 }
 0x15c   : > { %3124 = vmatmul.mubr.f32.gmra.mrb[14].mxu0 %v4238_v15  ;;  %3228 = vmatmul.mubr.f32.gmra.mrb[14].mxu1 %v3940_v56 }
 0x15d   : > { %3128 = vmatprep.mubr.f32.mxu0 %v3596_v14  ;;  %3232 = vmatprep.mubr.f32.mxu1 %v4239_v20  ;;  %v4242_v14 = vand.u32 4294901760, %v3792_v54 }
 0x160   : > { %3129 = vmatmul.mubr.f32.vlgmr.msra.gmra.mrb[0].mxu0 %v3602_v18  ;;  %3233 = vmatmul.mubr.f32.vlgmr.msra.gmra.mrb[0].mxu1 %v4240_v8  ;;  %v4243_v18 = vand.u32 4294901760, %v3806_v42 }
 0x161   : > { %3257 = vmatpush3.msra.mxu1 %v3588_v9  ;;  %3131 = vmatprep.mubr.f32.mxu0 %v3613_v25  ;;  %v4244_v9 = vand.u32 4294901760, %v3818_v4  ;;  %v4245_v25 = vand.u32 4294901760, %v3830_v11 }
 0x162   : > { %3235 = vmatprep.mubr.f32.mxu1 %v4241_v5  ;;  %3282 = vmatprep.subr.mxu1 %v3568_v1 }
 0x164   : > { %3132 = vmatmul.mubr.f32.gmra.mrb[2].mxu0 %v3623_v32  ;;  %3236 = vmatmul.mubr.f32.gmra.mrb[2].mxu1 %v4242_v14  ;;  %v4246_v32 = vand.u32 4294901760, %v3842_v33 }
 0x165   : > { %3134 = vmatprep.mubr.f32.mxu0 %v3633_v39  ;;  %3238 = vmatprep.mubr.f32.mxu1 %v4243_v18  ;;  %v4247_v39 = vand.u32 4294901760, %v4227_v3 }
 0x168   : > { %3135 = vmatmul.mubr.f32.gmra.mrb[4].mxu0 %v3644_v46  ;;  %3239 = vmatmul.mubr.f32.gmra.mrb[4].mxu1 %v4244_v9  ;;  %v4248_v46 = vand.u32 4294901760, %v4229_v63 }
 0x169   : > { %3137 = vmatprep.mubr.f32.mxu0 %v3654_v53  ;;  %3241 = vmatprep.mubr.f32.mxu1 %v4245_v25  ;;  %v4249_v53 = vand.u32 4294901760, %v4231_v43 }
 0x16c   : > { %3138 = vmatmul.mubr.f32.gmra.mrb[6].mxu0 %v3664_v60  ;;  %3242 = vmatmul.mubr.f32.gmra.mrb[6].mxu1 %v4246_v32  ;;  %v4250_v60 = vand.u32 4294901760, %v4233_v44 }
 0x16d   : > { %3140 = vmatprep.mubr.f32.mxu0 %v3674_v7  ;;  %3244 = vmatprep.mubr.f32.mxu1 %v4247_v39  ;;  %v4251_v7 = vand.u32 4294901760, %v4235_v47 }
 0x170   : > { %3141 = vmatmul.mubr.f32.gmra.mrb[8].mxu0 %v4228_v50  ;;  %3245 = vmatmul.mubr.f32.gmra.mrb[8].mxu1 %v4248_v46 }
 0x171   : > { %3143 = vmatprep.mubr.f32.mxu0 %v4230_v23  ;;  %3247 = vmatprep.mubr.f32.mxu1 %v4249_v53 }
 0x174   : > { %3144 = vmatmul.mubr.f32.gmra.mrb[10].mxu0 %v4232_v2  ;;  %3248 = vmatmul.mubr.f32.gmra.mrb[10].mxu1 %v4250_v60 }
 0x175   : > { %3146 = vmatprep.mubr.f32.mxu0 %v4234_v35  ;;  %3250 = vmatprep.mubr.f32.mxu1 %v4251_v7 }
 0x178   : > { %3147 = vmatmul.mubr.f32.gmra.mrb[12].mxu0 %v4236_v61  ;;  %3251 = vmatmul.mubr.f32.gmra.mrb[12].mxu1 %v4252_v57 }
 0x179   : > { %3149 = vmatprep.mubr.f32.mxu0 %v4237_v52  ;;  %3253 = vmatprep.mubr.f32.mxu1 %v1714_v10 }
 0x17c   : > { %3150 = vmatmul.mubr.f32.gmra.mrb[14].mxu0 %v4238_v15  ;;  %3254 = vmatmul.mubr.f32.gmra.mrb[14].mxu1 %v1724_v6 }
 0x17d   : > { %3258 = vmatprep.mubr.f32.mxu1 %v3754_v30 }
 0x180   : > { %3259 = vmatmul.mubr.f32.vlgmr.msra.gmra.mrb[0].mxu1 %v3763_v36 }
 0x181   : > { %3283 = vmatpush3.msra.mxu1 %v3568_v1  ;;  %3261 = vmatprep.mubr.f32.mxu1 %v3775_v29 }
 0x184   : > { %3262 = vmatmul.mubr.f32.gmra.mrb[2].mxu1 %v3788_v28 }
 0x185   : > { %3264 = vmatprep.mubr.f32.mxu1 %v3802_v51 }
 0x188   : > { %3265 = vmatmul.mubr.f32.gmra.mrb[4].mxu1 %v3815_v0 }
 0x189   : > { %3267 = vmatprep.mubr.f32.mxu1 %v3827_v59 }
 0x18c   : > { %3268 = vmatmul.mubr.f32.gmra.mrb[6].mxu1 %v3839_v45 }
 0x18d   : > { %3270 = vmatprep.mubr.f32.mxu1 %v3851_v31 }
 0x190   : > { %3271 = vmatmul.mubr.f32.gmra.mrb[8].mxu1 %v3863_v19 }
 0x191   : > { %3273 = vmatprep.mubr.f32.mxu1 %v3875_v16 }
 0x194   : > { %3274 = vmatmul.mubr.f32.gmra.mrb[10].mxu1 %v3888_v38 }
 0x195   : > { %3276 = vmatprep.mubr.f32.mxu1 %v3901_v24 }
 0x198   : > { %3277 = vmatmul.mubr.f32.gmra.mrb[12].mxu1 %v3913_v21 }
 0x199   : > { %3279 = vmatprep.mubr.f32.mxu1 %v3925_v22 }
 0x19c   : > { %3280 = vmatmul.mubr.f32.gmra.mrb[14].mxu1 %v3937_v17 }
 0x19d   : > { %3284 = vmatprep.mubr.f32.mxu1 %v3754_v30 }
 0x1a0   : > { %3285 = vmatmul.mubr.f32.vlgmr.msra.gmra.mrb[0].mxu1 %v3763_v36 }
 0x1a1   : > { %3287 = vmatprep.mubr.f32.mxu1 %v3775_v29 }
 0x1a4   : > { %3288 = vmatmul.mubr.f32.gmra.mrb[2].mxu1 %v3788_v28 }
 0x1a5   : > { %3290 = vmatprep.mubr.f32.mxu1 %v3802_v51 }
 0x1a8   : > { %3291 = vmatmul.mubr.f32.gmra.mrb[4].mxu1 %v3815_v0 }
 0x1a9   : > { %3293 = vmatprep.mubr.f32.mxu1 %v3827_v59 }
 0x1ac   : > { %3294 = vmatmul.mubr.f32.gmra.mrb[6].mxu1 %v3839_v45 }
 0x1ad   : > { %3296 = vmatprep.mubr.f32.mxu1 %v3851_v31 }
 0x1b0   : > { %3297 = vmatmul.mubr.f32.gmra.mrb[8].mxu1 %v3863_v19 }
 0x1b1   : > { %3299 = vmatprep.mubr.f32.mxu1 %v3875_v16 }
 0x1b4   : > { %3300 = vmatmul.mubr.f32.gmra.mrb[10].mxu1 %v3888_v38 }
 0x1b5   : > { %3302 = vmatprep.mubr.f32.mxu1 %v3901_v24 }
 0x1b8   : > { %3303 = vmatmul.mubr.f32.gmra.mrb[12].mxu1 %v3913_v21 }
 0x1b9   : > { %3305 = vmatprep.mubr.f32.mxu1 %v3925_v22 }
 0x1bc   : > { %3306 = vmatmul.mubr.f32.gmra.mrb[14].mxu1 %v3937_v17 }
 0x233   : > { %v3130_v1 = vpop.f32.mrb[0].mxu0 }
 0x234   : > { %v1311_v59 = vpop.f32.mrb[1].mxu0 }
 0x237   : > { %v3133_v13 = vpop.f32.mrb[2].mxu0 }
 0x238   : > { %v1323_v45 = vpop.f32.mrb[3].mxu0 }
 0x23b   : > { %v3136_v36 = vpop.f32.mrb[4].mxu0 }
 0x23c   : > { %v1406_v31 = vmin.f32 %v3130_v1, %v3136_v36  ;;  %v1335_v29 = vpop.f32.mrb[5].mxu0 }
 0x23d   : > { %v1405_v19 = vmin.f32 %v1311_v59, %v1335_v29 }
 0x23f   : > { %v3139_v30 = vpop.f32.mrb[6].mxu0 }
 0x240   : > { %v1408_v16 = vmin.f32 %v3133_v13, %v3139_v30  ;;  %v1347_v49 = vpop.f32.mrb[7].mxu0 }
 0x241   : > { %v1407_v51 = vmin.f32 %v1323_v45, %v1347_v49 }
 0x243   : > { %v3142_v28 = vpop.f32.mrb[8].mxu0 }
 0x244   : > { %v1410_v54 = vmin.f32 %v1406_v31, %v3142_v28  ;;  %v1359_v42 = vpop.f32.mrb[9].mxu0 }
 0x245   : > { %v1409_v0 = vmin.f32 %v1405_v19, %v1359_v42 }
 0x247   : > { %v3145_v4 = vpop.f32.mrb[10].mxu0 }
 0x248   : > { %v1412_v22 = vmin.f32 %v1408_v16, %v3145_v4  ;;  %v1371_v11 = vpop.f32.mrb[11].mxu0 }
 0x249   : > { %v1411_v33 = vmin.f32 %v1407_v51, %v1371_v11 }
 0x24b   : > { %v3148_v17 = vpop.f32.mrb[12].mxu0 }
 0x24c   : > { %v1414_v21 = vmin.f32 %v1410_v54, %v3148_v17  ;;  %v1383_v38 = vpop.f32.mrb[13].mxu0 }
 0x24d   : > { %v1413_v24 = vmin.f32 %v1409_v0, %v1383_v38 }
 0x24f   : > { %v1417_v10 = vmin.f32 %v1413_v24, %v1414_v21  ;;  %v3151_v40 = vpop.f32.mrb[14].mxu0 }
 0x250   : > { %v1416_v58 = vmin.f32 %v1412_v22, %v3151_v40  ;;  %v1395_v56 = vpop.f32.mrb[15].mxu0 }
 0x251   : > { %v1415_v6 = vmin.f32 %v1411_v33, %v1395_v56 }
 0x253   : > { %v1418_v27 = vmin.f32 %v1415_v6, %v1416_v58 }
 0x255   : > { %v1419_v34 = vmin.f32 %v1417_v10, %v1418_v27 }
 0x257   : > { %v1420_v41 = vrot.slane %v1419_v34, 4 }
 0x259   : > { %v1421_v48 = vmin.f32 %v1419_v34, %v1420_v41 }
 0x25b   : > { %v1422_v55 = vrot.slane %v1421_v48, 2 }
 0x25d   : > { %v1423_v62 = vmin.f32 %v1421_v48, %v1422_v55 }
 0x25f   : > { %v1424_v12 = vrot.slane %v1423_v62, 1 }
 0x261   : > { %v1425_v26 = vmin.f32 %v1423_v62, %v1424_v12 }
 0x263   : > { %2623 = vst [vmem:[%s227_s25] sm:$0x1] %v1425_v26 }
 0x26a   : > { %v2636_v37 = vld [vmem:[%s227_s25] sm:$0x1] }
 0x26b   : > { %v2637_v3 = vmax.f32 %v2636_v37, 0.0 }
 0x26d   : > { %v2638_v50 = vadd.f32 1e-08, %v2637_v3 }
 0x26f   : > { %3493 = vrsqrt.f32 %v2638_v50  ;;  %vm2641_vm1 = vcmp.eq.f32.partialorder %v2638_v50, inf  ;;  %v2644_v47 = vand.u32 2147483648, %v2638_v50  ;;  %vm2643_vm2 = vcmp.eq.f32.partialorder %v2638_v50, 0.0 }
 0x273   : > { %v3286_v63 = vpop.f32.mrb[0].mxu1 }
 0x274   : > { %v2503_v23 = vpop.f32.mrb[1].mxu1 }
 0x277   : > { %v3289_v43 = vpop.f32.mrb[2].mxu1 }
 0x278   : > { %v2515_v2 = vpop.f32.mrb[3].mxu1 }
 0x279   : > { %v3494_v44 = vpop.eup %3493 }
 0x27a   : > { %v2640_v35 = vmul.f32 %v3494_v44, %v2638_v50 }
 0x27b   : > { %v3292_v61 = vpop.f32.mrb[4].mxu1 }
 0x27c   : > { %v2642_v52 = vsel %vm2641_vm1, %v2638_v50, %v2640_v35  ;;  %v2598_v15 = vmin.f32 %v3286_v63, %v3292_v61  ;;  %v2527_v20 = vpop.f32.mrb[5].mxu1 }
 0x27d   : > { %v2645_v8 = vsel %vm2643_vm2, %v2644_v47, %v2642_v52  ;;  %v2597_v5 = vmin.f32 %v2503_v23, %v2527_v20 }
 0x27e   : > { %2646 = vst [vmem:[%s227_s25] sm:$0x1] %v2645_v8 }
 0x27f   : > { %v3295_v14 = vpop.f32.mrb[6].mxu1 }
 0x280   : > { %v2600_v18 = vmin.f32 %v3289_v43, %v3295_v14  ;;  %v2539_v9 = vpop.f32.mrb[7].mxu1 }
 0x281   : > { %v2599_v25 = vmin.f32 %v2515_v2, %v2539_v9 }
 0x283   : > { %v3298_v32 = vpop.f32.mrb[8].mxu1 }
 0x284   : > { %v2602_v39 = vmin.f32 %v2598_v15, %v3298_v32  ;;  %v2551_v46 = vpop.f32.mrb[9].mxu1 }
 0x285   : > { %v2601_v53 = vmin.f32 %v2597_v5, %v2551_v46 }
 0x287   : > { %v3301_v60 = vpop.f32.mrb[10].mxu1 }
 0x288   : > { %v2604_v7 = vmin.f32 %v2600_v18, %v3301_v60  ;;  %v2563_v57 = vpop.f32.mrb[11].mxu1 }
 0x289   : > { %v2603_v1 = vmin.f32 %v2599_v25, %v2563_v57 }
 0x28b   : > { %v3304_v59 = vpop.f32.mrb[12].mxu1 }
 0x28c   : > { %v2606_v13 = vmin.f32 %v2602_v39, %v3304_v59  ;;  %v2575_v45 = vpop.f32.mrb[13].mxu1 }
 0x28d   : > { %v2605_v36 = vmin.f32 %v2601_v53, %v2575_v45 }
 0x28f   : > { %v2609_v31 = vmin.f32 %v2605_v36, %v2606_v13  ;;  %v3307_v29 = vpop.f32.mrb[14].mxu1 }
 0x290   : > { %v2608_v19 = vmin.f32 %v2604_v7, %v3307_v29  ;;  %v2587_v30 = vpop.f32.mrb[15].mxu1 }
 0x291   : > { %v2607_v16 = vmin.f32 %v2603_v1, %v2587_v30 }
 0x293   : > { %v2610_v49 = vmin.f32 %v2607_v16, %v2608_v19 }
 0x295   : > { %v2611_v51 = vmin.f32 %v2609_v31, %v2610_v49 }
 0x297   : > { %v2612_v28 = vrot.slane %v2611_v51, 4 }
 0x299   : > { %v2613_v54 = vmin.f32 %v2611_v51, %v2612_v28 }
 0x29b   : > { %v2614_v42 = vrot.slane %v2613_v54, 2 }
 0x29d   : > { %v2615_v0 = vmin.f32 %v2613_v54, %v2614_v42 }
 0x29f   : > { %v2616_v4 = vrot.slane %v2615_v0, 1 }
 0x2a1   : > { %v2617_v22 = vmin.f32 %v2615_v0, %v2616_v4 }
 0x2a3   : > { %2652 = vst [vmem:[%s230_s28] sm:$0x1] %v2617_v22 }
 0x2aa   : > { %v2665_v11 = vld [vmem:[%s230_s28] sm:$0x1] }
 0x2ab   : > { %v2666_v33 = vmax.f32 %v2665_v11, 0.0 }
 0x2ad   : > { %v2667_v17 = vadd.f32 1e-08, %v2666_v33 }
 0x2af   : > { %3495 = vrsqrt.f32 %v2667_v17  ;;  %vm2670_vm3 = vcmp.eq.f32.partialorder %v2667_v17, inf  ;;  %v2673_v24 = vand.u32 2147483648, %v2667_v17  ;;  %vm2672_vm4 = vcmp.eq.f32.partialorder %v2667_v17, 0.0 }
 0x2b9   : > { %v3496_v21 = vpop.eup %3495 }
 0x2ba   : > { %v2669_v38 = vmul.f32 %v3496_v21, %v2667_v17 }
 0x2bc   : > { %v2671_v10 = vsel %vm2670_vm3, %v2667_v17, %v2669_v38 }
 0x2bd   : > { %v2674_v40 = vsel %vm2672_vm4, %v2673_v24, %v2671_v10 }
 0x2be   : > { %2675 = vst [vmem:[%s230_s28] sm:$0x1] %v2674_v40 }
 0x2bf PF: > { %s14_s14 = sadd.s32 1, %s3519_s14   ;;  %s4253_s12 = smov %s3515_s13 }
 0x2c0   : > { %p11_p5 = scmp.ge.s32.totalorder %s14_s14, 4   ;;  %s4254_s13 = smov %s4256_s15 }
 0x2c2   :  { %13 = sbr.rel (!%p11_p5) target bundleno = 2 (0x2), region = 103 }

</bundles_post_ra>
